<compile_context>
chip_gen: v7x
topology: tpu7x:2x2x1
jax: 0.10.0
libtpu: 0.0.40
codegen_flags: <defaults>
</compile_context>

<pallas_src>
import jax
import jax.numpy as jnp
from jax.experimental import pallas as pl
from jax.experimental.pallas import tpu as pltpu

EPS = 1e-5  # nn.LayerNorm default


def _round_up(x, m):
    return ((x + m - 1) // m) * m


def _prenorm_linear_kernel(x_ref, g_ref, b_ref, w_ref, wb_ref, o_ref):
    # x_ref: (TM, D) row tile; g/b/wb: (1, D); w: (D, D); o: (TM, D)
    x = x_ref[...].astype(jnp.float32)
    d = x.shape[-1]
    inv_d = jnp.float32(1.0 / d)

    # One-pass LayerNorm statistics: E[x], E[x^2]; biased variance like
    # torch.nn.LayerNorm.  Halves the cross-lane reduction traffic.
    s = jnp.sum(x, axis=-1, keepdims=True)
    sq = jnp.sum(x * x, axis=-1, keepdims=True)
    mean = s * inv_d
    var = jnp.maximum(sq * inv_d - mean * mean, 0.0)
    xn = (x - mean) * jax.lax.rsqrt(var + EPS)
    y = xn * g_ref[...].astype(jnp.float32) + b_ref[...].astype(jnp.float32)

    # fn = Linear(D, D): feed the MXU in the weight's native dtype (bf16 fast
    # path), accumulate in f32.  Only the small (TM, D) activation tile is cast.
    out = jnp.dot(y.astype(w_ref.dtype), w_ref[...],
                  preferred_element_type=jnp.float32)
    out = out + wb_ref[...].astype(jnp.float32)
    o_ref[...] = out.astype(o_ref.dtype)


def _pick_row_tile(M, D, x_itemsize, w_itemsize, out_itemsize,
                   max_row_tile=512, vmem_budget_bytes=12 * 1024 * 1024):
    """Largest row tile (multiple of 16) whose pipelined footprint fits the budget.

    Budget is conservative (<= v5e's 16 MiB default scoped VMEM, far under
    v7x's 64 MiB physical): double-buffered x/out tiles + double-buffered W +
    in-body f32 temporaries.
    """
    fixed = 2 * D * D * w_itemsize + 8 * D * 4              # W (2 bufs) + gamma/beta/wb
    per_row = 2 * D * (x_itemsize + out_itemsize) + 6 * D * 4
    budget_rows = max((vmem_budget_bytes - fixed) // max(per_row, 1), 16)
    rt = min(max_row_tile, int(budget_rows), _round_up(M, 16))
    rt = max(16, (rt // 16) * 16)                           # bf16-safe sublane multiple
    # Prefer >= 2 grid steps so both v7x TensorCores get work.
    if _round_up(M, rt) // rt == 1 and M > 16:
        rt = max(16, _round_up(pl.cdiv(M, 2), 16))
    return rt


def prenorm_linear(x, gamma, beta, w, wb, *, max_row_tile=512,
                   vmem_budget_bytes=12 * 1024 * 1024):
    """PreNorm(dim, Linear(dim, dim))(x) = Linear(LayerNorm(x)).

    x: (B, N, D); gamma/beta/wb: (1, D); w: (D, D).
    """
    B, N, D = x.shape
    M = B * N
    x_it = jnp.dtype(x.dtype).itemsize
    w_it = jnp.dtype(w.dtype).itemsize

    rt = _pick_row_tile(M, D, x_it, w_it, x_it, max_row_tile, vmem_budget_bytes)
    M_pad = _round_up(M, rt)

    x2 = x.reshape(M, D)
    if M_pad != M:
        # Zero-padded rows are finite through LayerNorm (centered == 0) and
        # are sliced off below.
        x2 = jnp.pad(x2, ((0, M_pad - M), (0, 0)))

    flops = 2 * M_pad * D * D + 8 * M_pad * D
    bytes_accessed = M_pad * D * x_it * 2 + D * D * w_it + 3 * D * 4

    out2 = pl.pallas_call(
        _prenorm_linear_kernel,
        out_shape=jax.ShapeDtypeStruct((M_pad, D), x.dtype),
        grid_spec=pl.GridSpec(
            grid=(M_pad // rt,),
            in_specs=[
                pl.BlockSpec((rt, D), lambda i: (i, 0)),   # x row tile
                pl.BlockSpec((1, D), lambda i: (0, 0)),    # gamma (constant index)
                pl.BlockSpec((1, D), lambda i: (0, 0)),    # beta
                pl.BlockSpec((D, D), lambda i: (0, 0)),    # W (constant index -> DMA'd once)
                pl.BlockSpec((1, D), lambda i: (0, 0)),    # linear bias
            ],
            out_specs=pl.BlockSpec((rt, D), lambda i: (i, 0)),
        ),
        compiler_params=pltpu.CompilerParams(
            dimension_semantics=("parallel",)),
        cost_estimate=pl.CostEstimate(
            flops=flops, transcendentals=M_pad, bytes_accessed=bytes_accessed),
    )(x2, gamma, beta, w, wb)

    if M_pad != M:
        out2 = out2[:M]
    return out2.reshape(B, N, D)


def prenorm_linear_ref(x, gamma, beta, w, wb):
    xf = x.astype(jnp.float32)
    mean = jnp.mean(xf, axis=-1, keepdims=True)
    var = jnp.mean((xf - mean) ** 2, axis=-1, keepdims=True)
    y = (xf - mean) * jax.lax.rsqrt(var + EPS) * gamma[0].astype(jnp.float32) \
        + beta[0].astype(jnp.float32)
    return y @ w.astype(jnp.float32) + wb[0].astype(jnp.float32)


if __name__ == "__main__":
    cases = [
        # (B, N, D, dtype, atol)
        (2, 256, 128, jnp.float32, 1e-4),   # M divides evenly into row tiles
        (2, 200, 128, jnp.float32, 1e-4),   # ragged M -> wrapper pads / slices
        (2, 256, 128, jnp.bfloat16, 3e-2),  # bf16 operands on the MXU, f32 accum
    ]
    for (B, N, D, dtype, atol) in cases:
        key = jax.random.PRNGKey(0)
        kx, kw, kb = jax.random.split(key, 3)

        x = jax.random.normal(kx, (B, N, D), dtype=jnp.float32).astype(dtype)
        # LayerNorm params: PyTorch default init (weight=1, bias=0)
        gamma = jnp.ones((1, D), dtype=dtype)
        beta = jnp.zeros((1, D), dtype=dtype)
        # fn = Linear(D, D) params, deterministic synthetic init
        w = (jax.random.normal(kw, (D, D), dtype=jnp.float32) * 0.05).astype(dtype)
        wb = (jax.random.normal(kb, (1, D), dtype=jnp.float32) * 0.05).astype(dtype)

        out = prenorm_linear(x, gamma, beta, w, wb)
        out = jax.block_until_ready(out)
        assert out.shape == (B, N, D)
        assert out.dtype == jnp.dtype(dtype)

        ref = prenorm_linear_ref(x, gamma, beta, w, wb)
        err = float(jnp.max(jnp.abs(out.astype(jnp.float32) - ref)))
        assert err < atol, f"mismatch (B={B},N={N},D={D},{dtype}): max err {err}"

    print("KERNEL_OK")
</pallas_src>

<mosaic_0001>
module attributes {stable_mosaic.version = 11 : i64} {
  func.func @_prenorm_linear_kernel(%arg0: i32, %arg1: memref<256x128xf32, #tpu.memory_space<vmem>>, %arg2: memref<1x128xf32, #tpu.memory_space<vmem>>, %arg3: memref<1x128xf32, #tpu.memory_space<vmem>>, %arg4: memref<128x128xf32, #tpu.memory_space<vmem>>, %arg5: memref<1x128xf32, #tpu.memory_space<vmem>>, %arg6: memref<256x128xf32, #tpu.memory_space<vmem>>) attributes {dimension_semantics = [#tpu.dimension_semantics<parallel>], iteration_bounds = array<i64: 2>, scalar_prefetch = 0 : i64, scratch_operands = 0 : i64, tpu.core_type = #tpu.core_type<tc>, window_params = [{transform_indices = @transform_0, window_bounds = array<i64: 256, 128>}, {pipeline_mode = #tpu.pipeline_mode<synchronous>, transform_indices = @transform_1, window_bounds = array<i64: 1, 128>}, {pipeline_mode = #tpu.pipeline_mode<synchronous>, transform_indices = @transform_2, window_bounds = array<i64: 1, 128>}, {pipeline_mode = #tpu.pipeline_mode<synchronous>, transform_indices = @transform_3, window_bounds = array<i64: 128, 128>}, {pipeline_mode = #tpu.pipeline_mode<synchronous>, transform_indices = @transform_4, window_bounds = array<i64: 1, 128>}, {transform_indices = @transform_5, window_bounds = array<i64: 256, 128>}]} {
    %c0 = arith.constant 0 : index
    %c0_0 = arith.constant 0 : index
    %0 = vector.load %arg1[%c0, %c0_0] : memref<256x128xf32, #tpu.memory_space<vmem>>, vector<256x128xf32>
    %cst = arith.constant dense<0.000000e+00> : vector<256xf32>
    %1 = vector.multi_reduction <add>, %0, %cst [1] : vector<256x128xf32> to vector<256xf32>
    %2 = vector.shape_cast %1 : vector<256xf32> to vector<256x1xf32>
    %3 = arith.mulf %0, %0 : vector<256x128xf32>
    %cst_1 = arith.constant dense<0.000000e+00> : vector<256xf32>
    %4 = vector.multi_reduction <add>, %3, %cst_1 [1] : vector<256x128xf32> to vector<256xf32>
    %5 = vector.shape_cast %4 : vector<256xf32> to vector<256x1xf32>
    %cst_2 = arith.constant 7.812500e-03 : f32
    %6 = vector.broadcast %cst_2 : f32 to vector<256x1xf32>
    %7 = arith.mulf %2, %6 : vector<256x1xf32>
    %cst_3 = arith.constant 7.812500e-03 : f32
    %8 = vector.broadcast %cst_3 : f32 to vector<256x1xf32>
    %9 = arith.mulf %5, %8 : vector<256x1xf32>
    %10 = arith.mulf %7, %7 : vector<256x1xf32>
    %11 = arith.subf %9, %10 : vector<256x1xf32>
    %cst_4 = arith.constant 0.000000e+00 : f32
    %12 = vector.broadcast %cst_4 : f32 to vector<256x1xf32>
    %13 = arith.maximumf %11, %12 : vector<256x1xf32>
    %14 = vector.broadcast %7 : vector<256x1xf32> to vector<256x128xf32>
    %15 = arith.subf %0, %14 : vector<256x128xf32>
    %cst_5 = arith.constant 9.99999974E-6 : f32
    %16 = vector.broadcast %cst_5 : f32 to vector<256x1xf32>
    %17 = arith.addf %13, %16 : vector<256x1xf32>
    %18 = math.rsqrt %17 : vector<256x1xf32>
    %19 = vector.broadcast %18 : vector<256x1xf32> to vector<256x128xf32>
    %20 = arith.mulf %15, %19 : vector<256x128xf32>
    %c0_6 = arith.constant 0 : index
    %c0_7 = arith.constant 0 : index
    %21 = vector.load %arg2[%c0_6, %c0_7] : memref<1x128xf32, #tpu.memory_space<vmem>>, vector<1x128xf32>
    %22 = vector.broadcast %21 : vector<1x128xf32> to vector<256x128xf32>
    %23 = arith.mulf %20, %22 : vector<256x128xf32>
    %c0_8 = arith.constant 0 : index
    %c0_9 = arith.constant 0 : index
    %24 = vector.load %arg3[%c0_8, %c0_9] : memref<1x128xf32, #tpu.memory_space<vmem>>, vector<1x128xf32>
    %25 = vector.broadcast %24 : vector<1x128xf32> to vector<256x128xf32>
    %26 = arith.addf %23, %25 : vector<256x128xf32>
    %c0_10 = arith.constant 0 : index
    %c0_11 = arith.constant 0 : index
    %27 = vector.load %arg4[%c0_10, %c0_11] : memref<128x128xf32, #tpu.memory_space<vmem>>, vector<128x128xf32>
    %cst_12 = arith.constant dense<0.000000e+00> : vector<256x128xf32>
    %28 = tpu.matmul %26, %27, %cst_12 {dimension_numbers = #tpu.dot_dimension_numbers<[1], [0], [0], [1], [0, 0, 1, 1], [], []>} : vector<256x128xf32>, vector<128x128xf32>, vector<256x128xf32> -> vector<256x128xf32>
    %c0_13 = arith.constant 0 : index
    %c0_14 = arith.constant 0 : index
    %29 = vector.load %arg5[%c0_13, %c0_14] : memref<1x128xf32, #tpu.memory_space<vmem>>, vector<1x128xf32>
    %30 = vector.broadcast %29 : vector<1x128xf32> to vector<256x128xf32>
    %31 = arith.addf %28, %30 : vector<256x128xf32>
    %c0_15 = arith.constant 0 : index
    %c0_16 = arith.constant 0 : index
    %32 = vector.load %arg6[%c0_15, %c0_16] : memref<256x128xf32, #tpu.memory_space<vmem>>, vector<256x128xf32>
    tpu.vector_store %arg6[%c0_15, %c0_16], %31 {strides = array<i32>} : memref<256x128xf32, #tpu.memory_space<vmem>>, vector<256x128xf32>,
    return
  }
  func.func @transform_0(%arg0: i32) -> (i32, i32) {
    %c0_i32 = arith.constant 0 : i32
    %c0_i32_0 = arith.constant 0 : i32
    return %arg0, %c0_i32 : i32, i32
  }
  func.func @transform_1(%arg0: i32) -> (i32, i32) {
    %c0_i32 = arith.constant 0 : i32
    %c0_i32_0 = arith.constant 0 : i32
    %c0_i32_1 = arith.constant 0 : i32
    return %c0_i32, %c0_i32_0 : i32, i32
  }
  func.func @transform_2(%arg0: i32) -> (i32, i32) {
    %c0_i32 = arith.constant 0 : i32
    %c0_i32_0 = arith.constant 0 : i32
    %c0_i32_1 = arith.constant 0 : i32
    return %c0_i32, %c0_i32_0 : i32, i32
  }
  func.func @transform_3(%arg0: i32) -> (i32, i32) {
    %c0_i32 = arith.constant 0 : i32
    %c0_i32_0 = arith.constant 0 : i32
    %c0_i32_1 = arith.constant 0 : i32
    return %c0_i32, %c0_i32_0 : i32, i32
  }
  func.func @transform_4(%arg0: i32) -> (i32, i32) {
    %c0_i32 = arith.constant 0 : i32
    %c0_i32_0 = arith.constant 0 : i32
    %c0_i32_1 = arith.constant 0 : i32
    return %c0_i32, %c0_i32_0 : i32, i32
  }
  func.func @transform_5(%arg0: i32) -> (i32, i32) {
    %c0_i32 = arith.constant 0 : i32
    %c0_i32_0 = arith.constant 0 : i32
    return %arg0, %c0_i32 : i32, i32
  }
}

</mosaic_0001>

<bundles_post_ra>
// kernel: tpu_custom_call.1
= control target key start
LH: loop header
LB: loop body
LE: loop exit
PB: predicated region body
PF: predicated region fallthrough
CT: control target
= control target key end

     0   :  { %10 = vsyncpa [#allocation3], 0  ;;  %s2422_s0 = inlined_call_operand.hbm [shape: f32[512,128], index: 0, kind: input, shape index: {}]   ;;  %s2423_s1 = inlined_call_operand.vmem [shape: f32[1,128], index: 1, kind: input, shape index: {}]   ;;  %s2424_s2 = inlined_call_operand.vmem [shape: f32[1,128], index: 2, kind: input, shape index: {}]   ;;  %s2425_s3 = inlined_call_operand.hbm [shape: f32[128,128], index: 3, kind: input, shape index: {}]   ;;  %s2426_s4 = inlined_call_operand.vmem [shape: f32[1,128], index: 4, kind: input, shape index: {}]   ;;  %s2427_s5 = inlined_call_operand.hbm [shape: f32[512,128], index: 5, kind: output, shape index: {}]  }
   0x1   :  { %12 = vsyncpa [#allocation3 + $0x1], 0 }
   0x2   :  { %13 = vsyncpa [#allocation6], 0 }
   0x3   :  { %14 = vsyncpa [#allocation4], 0 }
   0x4   :  { %16 = vsyncpa [#allocation4 + $0x1], 0  ;;  %s1684_s18 = smov 0   ;;  %s1686_s19 = smov 0  }
   0x5   :  { %s1688_s20 = smov 0   ;;  %s1690_s21 = smov 0  }
   0x6 LB: > { %s1705_s22 = sadd.s32 4294967295, %s1645_s21   ;;  %s1195_s23 = sadd.s32 4294967294, %s1645_s21   ;;  %s1645_s21 = sphi %s1690_s21, %s2447_s21   ;;  %s1641_s20 = sphi %s1688_s20, %s2446_s20   ;;  %s1637_s19 = sphi %s1686_s19, %s2445_s19   ;;  %s1633_s18 = sphi %s1684_s18, %s2444_s18  }
   0x7   : > { %p42_p0 = scmp.ne.s32.totalorder %s1637_s19, %s1633_s18  ;;  %p2428_p1 = scmp.eq.s32.totalorder %s1705_s22, 0 }
   0x8   : > { %p156_p3 = scmp.eq.s32.totalorder %s1195_s23, 1  ;;  %p1196_p5 = scmp.ge.s32.totalorder %s1645_s21, 1 }
   0x9   : > { %p1714_p4 = por %p2428_p1, %p42_p0  ;;  %p163_p7 = scmp.lt.s32.totalorder %s1645_s21, 3 }
   0xa   : > { %p1719_p6 = por %p156_p3, %p42_p0  ;;  %s1647_s27 = smov [#allocation5]  }
   0xb   : > { %s2431_s24 = scalar_select %p1714_p4, 1, 0 }
   0xc   : > { %s2432_s25 = scalar_select %p1719_p6, 1, 0 }
   0xd   : > { %p1724_p8 = pnand %p1196_p5, %p163_p7  ;;  %s181_s28 = sshll.u32 %s1647_s27, 4  ;;  %s1728_s28 = int_to_ptr.vmem [resolvable:$true] %s181_s28 }
   0xe   : > { %s1740_s30 = sadd.s32 1, %s1645_s21   ;;  %s29_s6 = sadd.s32 1, %s1641_s20 }
   0xf   : > { %s2433_s26 = scalar_select %p1724_p8, 1, 0 }
  0x10   : > { %p1400_p9 = pneg %p1724_p8  ;;  %s26_s7 = ssub.s32 %s1645_s21, %s1740_s30 }
  0x11   : > { %s1517_s10 = scalar_lea.hbm %s2425_s3, 2048 }
  0x12   : > { %p1735_p11 = pnand %p1400_p9, %p2428_p1  ;;  %p1518_p12 = scmp.ne.s32.totalorder %s2425_s3, %s1517_s10 }
  0x13   : > { %p1524_p5 = scmp.lt.u32.totalorder %s1517_s10, %s2425_s3 }
  0x14   : > { %p1519_p13 = pneg %p1735_p11 }
  0x16   : > { %p1520_p0 = pnand %p1519_p13, %p1518_p12 }
  0x18   : > { %p1521_p3 = pneg %p1520_p0 }
  0x1a   : > { %p1526_p7 = pnand %p1524_p5, %p1521_p3 }
  0x1c   : > { %1529 = shalt.err (!%p1526_p7)
}
  0x1d   : > { %s1530_s15 = scalar_lea.vmem %s1728_s28, 2048  ;;  %p1538_p2 = scmp.lt.s32.totalorder %s1728_s28, %s1728_s28 }
  0x1e   : > { %p1531_p9 = scmp.ne.s32.totalorder %s1728_s28, %s1530_s15  ;;  %p1539_p6 = scmp.lt.s32.totalorder %s1530_s15, %s1530_s15 }
  0x20   : > { %p1533_p10 = pnand %p1531_p9, %p1519_p13  ;;  %p1540_p4 = por %p1539_p6, %p1538_p2 }
  0x22   : > { %p1534_p1 = pneg %p1533_p10 }
  0x24   : > { %p1541_p8 = pnand %p1540_p4, %p1534_p1 }
  0x26   : > { %1544 = shalt.err (!%p1541_p8)
}
  0x27   : > { %s1648_s16 = smov 128   ;;  %s1649_s17 = smov 8  }
  0x28   : > { %1403 = dma.hbm_to_vmem [thread:$0]  (!%p1735_p11), %s2425_s3, 2048, %s1728_s28, [#allocation6], %s1648_s16, %s1648_s16, %s1649_s17  }
  0x29   : > { %p27_p1 = scmp.eq.s32.totalorder %s26_s7, 0  ;;  %p36_p2 = scmp.ne.s32.totalorder %s1641_s20, %s1637_s19 }
  0x2a   : > { %p37_p4 = scmp.eq.s32.totalorder %s1645_s21, 0  ;;  %p1413_p6 = scmp.lt.s32.totalorder %s1645_s21, 2 }
  0x2b   : > { %s1774_s8 = scalar_select %p27_p1, %s1641_s20, %s29_s6  }
  0x2c   : > { %p38_p8 = por %p37_p4, %p36_p2  ;;  %p2435_p10 = scmp.eq.s32.totalorder %s1705_s22, 1 }
  0x2d   : > { %s198_s29 = sand.u32 1, %s1641_s20   ;;  %s1214_s10 = sshll.u32 %s1645_s21, 12 }
  0x2e   : > { %p1778_p12 = por %p2435_p10, %p36_p2  ;;  %s1199_s11 = sshll.u32 %s198_s29, 8 }
  0x2f   : > { %s1787_s14 = scalar_lea.hbm %s2422_s0, %s1214_s10  ;;  %s202_s28 = scalar_lea.vmem [#allocation2], %s1199_s11 }
  0x30   : > { %s209_s6 = sshll.u32 %s202_s28, 4  ;;  %p1789_p11 = pnand %p1413_p6, %p38_p8  ;;  %s1793_s6 = int_to_ptr.vmem [resolvable:$true] %s209_s6 }
  0x31   : > { %s1795_s15 = scalar_lea.sflag [#allocation3], %s198_s29  ;;  %s1545_s23 = scalar_lea.hbm %s1787_s14, 4096 }
  0x32   : > { %p1546_p13 = scmp.ne.s32.totalorder %s1787_s14, %s1545_s23  ;;  %p1547_p0 = pneg %p1789_p11 }
  0x33   : > { %s1550_s11 = scalar_lea.hbm %s2422_s0, 8192  ;;  %p1551_p7 = scmp.lt.u32.totalorder %s1787_s14, %s2422_s0 }
  0x34   : > { %p1548_p3 = pnand %p1547_p0, %p1546_p13  ;;  %p1552_p9 = scmp.lt.u32.totalorder %s1550_s11, %s1545_s23 }
  0x35   : > { %p1554_p2 = scmp.lt.u32.totalorder %s1545_s23, %s1787_s14 }
  0x36   : > { %p1549_p5 = pneg %p1548_p3  ;;  %p1553_p1 = por %p1552_p9, %p1551_p7 }
  0x38   : > { %p1555_p4 = por %p1554_p2, %p1553_p1 }
  0x3a   : > { %p1556_p6 = pnand %p1555_p4, %p1549_p5 }
  0x3c   : > { %1559 = shalt.err (!%p1556_p6)
}
  0x3d   : > { %s1560_s29 = scalar_lea.vmem %s1793_s6, 4096  ;;  %s1650_s28 = smov [#allocation2]  }
  0x3e   : > { %p1561_p8 = scmp.ne.s32.totalorder %s1793_s6, %s1560_s29  ;;  %s1565_s27 = sshll.u32 %s1650_s28, 4  ;;  %s1566_s27 = int_to_ptr.vmem [resolvable:$false] %s1565_s27 }
  0x3f   : > { %s1567_s10 = scalar_lea.vmem %s1566_s27, 8192  ;;  %p1568_p3 = scmp.lt.s32.totalorder %s1793_s6, %s1566_s27 }
  0x40   : > { %p1563_p10 = pnand %p1561_p8, %p1547_p0  ;;  %p1569_p7 = scmp.lt.s32.totalorder %s1567_s10, %s1560_s29 }
  0x42   : > { %p1564_p13 = pneg %p1563_p10  ;;  %p1570_p9 = por %p1569_p7, %p1568_p3 }
  0x44   : > { %p1571_p1 = pnand %p1570_p9, %p1564_p13 }
  0x46   : > { %1574 = shalt.err (!%p1571_p1)
}
  0x47   : > { %1407 = dma.hbm_to_vmem [thread:$0]  (!%p1789_p11), %s1787_s14, 4096, %s1793_s6, %s1795_s15, %s1648_s16, %s1648_s16, %s1649_s17  }
  0x48   : > { %p2438_p0 = scmp.ne.s32.totalorder %s2433_s26, 0 }
  0x49   : > { %s1829_s23 = sand.u32 (!%p2438_p0), 1, %s1637_s19   ;;  %p2439_p5 = scmp.ne.s32.totalorder (!%p2438_p0), %s2431_s24, 0 }
  0x4a   : > { %221 = sbr.rel (%p2438_p0) target bundleno = 608 (0x260), region = 40  ;;  %s1203_s11 = sshll.u32 (!%p2438_p0), %s1829_s23, 8 }
  0x4b   : > { %s224_s12 = scalar_lea.sflag (!%p2438_p0), [#allocation3], %s1829_s23  ;;  %s1835_s7 = scalar_lea.vmem (!%p2438_p0), [#allocation2], %s1203_s11 }
  0x51   : > { %1620 = dma.done.wait (%p2439_p5), %s224_s12, 4096  }
  0x52   : > { %1622 = vsyncadd (%p2439_p5), %s224_s12, 4294963200  ;;  %p2440_p11 = scmp.eq.s32.totalorder %s1705_s22, 0 }
  0x54   : > { %1624 = dma.done.wait (%p2440_p11), [#allocation6], 2048   ;;  %p2441_p2 = pmov %p2440_p11 }
  0x55   : > { %v1846_v0 = vld [vmem:[%s1835_s7 + $0x8] sm:$0xff]  ;;  %v1849_v1 = vld [vmem:[%s1835_s7] sm:$0xff]  ;;  %v1870_v8 = vld [vmem:[%s1835_s7 + $0x90] sm:$0xff]  ;;  %s2309_s15 = scalar_lea.vmem [#allocation7], %s1203_s11  ;;  %s1215_s13 = sshll.u32 %s1705_s22, 12 }
  0x56   : > { %1626 = vsyncadd (%p2441_p2), [#allocation6], 4294965248  ;;  %294 = vadd.xlane.f32.xlu1 %v1846_v0  ;;  %292 = vadd.xlane.f32.xlu0 %v1849_v1  ;;  %v1854_v2 = vld [vmem:[%s1835_s7 + $0x88] sm:$0xff]  ;;  %v1857_v3 = vld [vmem:[%s1835_s7 + $0x80] sm:$0xff]  ;;  %v356_v5 = vmul.f32 %v1849_v1, %v1849_v1  ;;  %v357_v7 = vmul.f32 %v1846_v0, %v1846_v0  ;;  %v374_v15 = vmul.f32 %v1870_v8, %v1870_v8  ;;  %s1112_s29 = sshll.u32 %s2309_s15, 4  ;;  %s2371_s10 = scalar_lea.hbm %s2427_s5, %s1215_s13  ;;  %s2373_s29 = int_to_ptr.vmem [resolvable:$true] %s1112_s29 }
  0x57   : > { %v372_v4 = vmul.f32 %v1857_v3, %v1857_v3  ;;  %v373_v6 = vmul.f32 %v1854_v2, %v1854_v2  ;;  %v1873_v9 = vld [vmem:[%s1835_s7 + $0x10] sm:$0xff]  ;;  %v818_v10 = vld [vmem:[#allocation5] sm:$0xff]  ;;  %v819_v11 = vld [vmem:[#allocation5 + $0x8] sm:$0xff]  ;;  %s1099_s22 = scalar_lea.sflag [#allocation4], %s1829_s23  ;;  %s1575_s11 = scalar_lea.vmem %s2373_s29, 4096 }
  0x58   : > { %v1878_v12 = vld [vmem:[%s1835_s7 + $0x98] sm:$0xff]  ;;  %v1344_v14 = vpack.c.bf16 %v819_v11, %v818_v10  ;;  %v358_v16 = vmul.f32 %v1873_v9, %v1873_v9  ;;  %v820_v17 = vld [vmem:[#allocation5 + $0x10] sm:$0xff]  ;;  %v822_v22 = vld [vmem:[#allocation5 + $0x20] sm:$0xff]  ;;  %p1576_p4 = scmp.ne.s32.totalorder %s2373_s29, %s1575_s11  ;;  %s1651_s12 = smov [#allocation7]  }
  0x59   : > { %v1881_v13 = vld [vmem:[%s1835_s7 + $0x18] sm:$0xff]  ;;  %v375_v20 = vmul.f32 %v1878_v12, %v1878_v12  ;;  %v823_v23 = vld [vmem:[#allocation5 + $0x28] sm:$0xff]  ;;  %v1894_v25 = vld [vmem:[%s1835_s7 + $0xa0] sm:$0xff] }
  0x5a   : > { %326 = vadd.xlane.f32.xlu1 %v1854_v2  ;;  %324 = vadd.xlane.f32.xlu0 %v1857_v3  ;;  %v821_v18 = vld [vmem:[#allocation5 + $0x18] sm:$0xff]  ;;  %v359_v21 = vmul.f32 %v1881_v13, %v1881_v13  ;;  %v1352_v24 = vpack.c.bf16 %v823_v23, %v822_v22  ;;  %v1897_v26 = vld [vmem:[%s1835_s7 + $0x20] sm:$0xff]  ;;  %v824_v27 = vld [vmem:[#allocation5 + $0x30] sm:$0xff]  ;;  %v376_v35 = vmul.f32 %v1894_v25, %v1894_v25  ;;  %p1577_p6 = pnand %p1576_p4, %p1778_p12 }
  0x5b   : > { %1345 = vmatprep.subr.bf16.mxu0 %v1344_v14  ;;  %1376 = vmatprep.subr.bf16.mxu1 %v1344_v14  ;;  %v1348_v19 = vpack.c.bf16 %v821_v18, %v820_v17  ;;  %v825_v28 = vld [vmem:[#allocation5 + $0x38] sm:$0xff]  ;;  %v1902_v30 = vld [vmem:[%s1835_s7 + $0xa8] sm:$0xff]  ;;  %v826_v32 = vld [vmem:[#allocation5 + $0x40] sm:$0xff]  ;;  %v360_v36 = vmul.f32 %v1897_v26, %v1897_v26 }
  0x5c   : > { %1347 = vmatpush3.bf16.msra.mxu0 %v1344_v14  ;;  %1384 = vmatpush3.bf16.msra.mxu1 %v1344_v14  ;;  %v1356_v29 = vpack.c.bf16 %v825_v28, %v824_v27  ;;  %v1905_v31 = vld [vmem:[%s1835_s7 + $0x28] sm:$0xff]  ;;  %v828_v37 = vld [vmem:[#allocation5 + $0x50] sm:$0xff]  ;;  %v829_v38 = vld [vmem:[#allocation5 + $0x58] sm:$0xff]  ;;  %v377_v40 = vmul.f32 %v1902_v30, %v1902_v30  ;;  %p1578_p8 = pneg %p1577_p6 }
  0x5d   : > { %1349 = vmatprep.subr.bf16.mxu0 %v1348_v19  ;;  %1377 = vmatprep.subr.bf16.mxu1 %v1348_v19  ;;  %v827_v33 = vld [vmem:[#allocation5 + $0x48] sm:$0xff]  ;;  %v1364_v39 = vpack.c.bf16 %v829_v38, %v828_v37  ;;  %v361_v41 = vmul.f32 %v1905_v31, %v1905_v31  ;;  %v830_v42 = vld [vmem:[#allocation5 + $0x60] sm:$0xff]  ;;  %v1918_v45 = vld [vmem:[%s1835_s7 + $0xb0] sm:$0xff] }
  0x5e   : > { %420 = vadd.xlane.f32.xlu1 %v372_v4  ;;  %388 = vadd.xlane.f32.xlu0 %v356_v5  ;;  %v1360_v34 = vpack.c.bf16 %v827_v33, %v826_v32  ;;  %v831_v43 = vld [vmem:[#allocation5 + $0x68] sm:$0xff]  ;;  %v1921_v46 = vld [vmem:[%s1835_s7 + $0x30] sm:$0xff]  ;;  %v833_v48 = vld [vmem:[#allocation5 + $0x78] sm:$0xff]  ;;  %v378_v52 = vmul.f32 %v1918_v45, %v1918_v45 }
  0x5f   : > { %v1368_v44 = vpack.c.bf16 %v831_v43, %v830_v42  ;;  %v832_v47 = vld [vmem:[#allocation5 + $0x70] sm:$0xff]  ;;  %v1926_v50 = vld [vmem:[%s1835_s7 + $0xb8] sm:$0xff]  ;;  %v362_v53 = vmul.f32 %v1921_v46, %v1921_v46  ;;  %v1942_v56 = vld [vmem:[%s1835_s7 + $0xc0] sm:$0xff] }
  0x60   : > { %1351 = vmatpush3.bf16.msra.mxu0 %v1348_v19  ;;  %1385 = vmatpush3.bf16.msra.mxu1 %v1348_v19  ;;  %v1372_v49 = vpack.c.bf16 %v833_v48, %v832_v47  ;;  %v1929_v51 = vld [vmem:[%s1835_s7 + $0x38] sm:$0xff]  ;;  %v379_v54 = vmul.f32 %v1926_v50, %v1926_v50  ;;  %v1945_v57 = vld [vmem:[%s1835_s7 + $0x40] sm:$0xff]  ;;  %v1950_v58 = vld [vmem:[%s1835_s7 + $0xc8] sm:$0xff]  ;;  %v380_v60 = vmul.f32 %v1942_v56, %v1942_v56 }
  0x61   : > { %1353 = vmatprep.subr.bf16.mxu0 %v1352_v24  ;;  %1378 = vmatprep.subr.bf16.mxu1 %v1352_v24  ;;  %v363_v55 = vmul.f32 %v1929_v51, %v1929_v51  ;;  %v1953_v59 = vld [vmem:[%s1835_s7 + $0x48] sm:$0xff]  ;;  %v364_v61 = vmul.f32 %v1945_v57, %v1945_v57  ;;  %v381_v62 = vmul.f32 %v1950_v58, %v1950_v58  ;;  %v1966_v4 = vld [vmem:[%s1835_s7 + $0xd0] sm:$0xff]  ;;  %v1993_v17 = vld [vmem:[%s1835_s7 + $0x60] sm:$0xff] }
  0x62   : > { %422 = vadd.xlane.f32.xlu1 %v373_v6  ;;  %390 = vadd.xlane.f32.xlu0 %v357_v7  ;;  %v365_v63 = vmul.f32 %v1953_v59, %v1953_v59  ;;  %v1969_v5 = vld [vmem:[%s1835_s7 + $0x50] sm:$0xff]  ;;  %v1974_v6 = vld [vmem:[%s1835_s7 + $0xd8] sm:$0xff]  ;;  %v382_v10 = vmul.f32 %v1966_v4, %v1966_v4  ;;  %v1998_v18 = vld [vmem:[%s1835_s7 + $0xe8] sm:$0xff] }
  0x63   : > { %v1977_v7 = vld [vmem:[%s1835_s7 + $0x58] sm:$0xff]  ;;  %v366_v11 = vmul.f32 %v1969_v5, %v1969_v5  ;;  %v383_v14 = vmul.f32 %v1974_v6, %v1974_v6  ;;  %v2001_v19 = vld [vmem:[%s1835_s7 + $0x68] sm:$0xff]  ;;  %v385_v22 = vmul.f32 %v1998_v18, %v1998_v18  ;;  %v2017_v27 = vld [vmem:[%s1835_s7 + $0x70] sm:$0xff] }
  0x64   : > { %1355 = vmatpush3.bf16.msra.mxu0 %v1352_v24  ;;  %1386 = vmatpush3.bf16.msra.mxu1 %v1352_v24  ;;  %v369_v23 = vmul.f32 %v2001_v19, %v2001_v19  ;;  %v2014_v24 = vld [vmem:[%s1835_s7 + $0xf0] sm:$0xff]  ;;  %v2022_v28 = vld [vmem:[%s1835_s7 + $0xf8] sm:$0xff]  ;;  %v370_v33 = vmul.f32 %v2017_v27, %v2017_v27 }
  0x65   : > { %1357 = vmatprep.subr.bf16.mxu0 %v1356_v29  ;;  %1379 = vmatprep.subr.bf16.mxu1 %v1356_v29  ;;  %v386_v32 = vmul.f32 %v2014_v24, %v2014_v24 }
  0x66   : > { %328 = vadd.xlane.f32.xlu1 %v1870_v8  ;;  %296 = vadd.xlane.f32.xlu0 %v1873_v9 }
  0x68   : > { %1359 = vmatpush3.bf16.msra.mxu0 %v1356_v29  ;;  %1387 = vmatpush3.bf16.msra.mxu1 %v1356_v29  ;;  %v2025_v29 = vld [vmem:[%s1835_s7 + $0x78] sm:$0xff] }
  0x69   : > { %1361 = vmatprep.subr.bf16.mxu0 %v1360_v34  ;;  %1380 = vmatprep.subr.bf16.mxu1 %v1360_v34 }
  0x6a   : > { %330 = vadd.xlane.f32.xlu1 %v1878_v12  ;;  %298 = vadd.xlane.f32.xlu0 %v1881_v13 }
  0x6c   : > { %1363 = vmatpush3.bf16.msra.mxu0 %v1360_v34  ;;  %1388 = vmatpush3.bf16.msra.mxu1 %v1360_v34  ;;  %v387_v34 = vmul.f32 %v2022_v28, %v2022_v28 }
  0x6d   : > { %1365 = vmatprep.subr.bf16.mxu0 %v1364_v39  ;;  %1381 = vmatprep.subr.bf16.mxu1 %v1364_v39 }
  0x6e   : > { %424 = vadd.xlane.f32.xlu1 %v374_v15  ;;  %392 = vadd.xlane.f32.xlu0 %v358_v16  ;;  %v367_v15 = vmul.f32 %v1977_v7, %v1977_v7  ;;  %v1990_v16 = vld [vmem:[%s1835_s7 + $0xe0] sm:$0xff]  ;;  %s1579_s7 = sshll.u32 %s1651_s12, 4  ;;  %s1580_s7 = int_to_ptr.vmem [resolvable:$false] %s1579_s7 }
  0x6f   : > { %s1581_s24 = scalar_lea.vmem %s1580_s7, 8192  ;;  %p1582_p10 = scmp.lt.s32.totalorder %s2373_s29, %s1580_s7 }
  0x70   : > { %1367 = vmatpush3.bf16.msra.mxu0 %v1364_v39  ;;  %1389 = vmatpush3.bf16.msra.mxu1 %v1364_v39  ;;  %p1583_p13 = scmp.lt.s32.totalorder %s1581_s24, %s1575_s11 }
  0x71   : > { %1369 = vmatprep.subr.bf16.mxu0 %v1368_v44  ;;  %1382 = vmatprep.subr.bf16.mxu1 %v1368_v44 }
  0x72   : > { %426 = vadd.xlane.f32.xlu1 %v375_v20  ;;  %394 = vadd.xlane.f32.xlu0 %v359_v21  ;;  %v384_v20 = vmul.f32 %v1990_v16, %v1990_v16  ;;  %v368_v21 = vmul.f32 %v1993_v17, %v1993_v17  ;;  %p1584_p3 = por %p1583_p13, %p1582_p10 }
  0x74   : > { %1371 = vmatpush3.bf16.msra.mxu0 %v1368_v44  ;;  %1390 = vmatpush3.bf16.msra.mxu1 %v1368_v44  ;;  %p1585_p7 = pnand %p1584_p3, %p1578_p8 }
  0x75   : > { %1373 = vmatprep.subr.bf16.mxu0 %v1372_v49  ;;  %1383 = vmatprep.subr.bf16.mxu1 %v1372_v49 }
  0x76   : > { %332 = vadd.xlane.f32.xlu1 %v1894_v25  ;;  %300 = vadd.xlane.f32.xlu0 %v1897_v26 }
  0x78   : > { %1375 = vmatpush3.bf16.msra.mxu0 %v1372_v49  ;;  %1391 = vmatpush3.bf16.msra.mxu1 %v1372_v49 }
  0x7a   : > { %334 = vadd.xlane.f32.xlu1 %v1902_v30  ;;  %302 = vadd.xlane.f32.xlu0 %v1905_v31 }
  0x7e   : > { %428 = vadd.xlane.f32.xlu1 %v376_v35  ;;  %396 = vadd.xlane.f32.xlu0 %v360_v36  ;;  %v371_v35 = vmul.f32 %v2025_v29, %v2025_v29 }
  0x82   : > { %430 = vadd.xlane.f32.xlu1 %v377_v40  ;;  %398 = vadd.xlane.f32.xlu0 %v361_v41 }
  0x86   : > { %336 = vadd.xlane.f32.xlu1 %v1918_v45  ;;  %304 = vadd.xlane.f32.xlu0 %v1921_v46 }
  0x8a   : > { %338 = vadd.xlane.f32.xlu1 %v1926_v50  ;;  %306 = vadd.xlane.f32.xlu0 %v1929_v51 }
  0x8e   : > { %432 = vadd.xlane.f32.xlu1 %v378_v52  ;;  %400 = vadd.xlane.f32.xlu0 %v362_v53 }
  0x92   : > { %434 = vadd.xlane.f32.xlu1 %v379_v54  ;;  %402 = vadd.xlane.f32.xlu0 %v363_v55 }
  0x96   : > { %340 = vadd.xlane.f32.xlu1 %v1942_v56  ;;  %308 = vadd.xlane.f32.xlu0 %v1945_v57 }
  0x9a   : > { %342 = vadd.xlane.f32.xlu1 %v1950_v58  ;;  %310 = vadd.xlane.f32.xlu0 %v1953_v59 }
  0x9e   : > { %436 = vadd.xlane.f32.xlu1 %v380_v60  ;;  %404 = vadd.xlane.f32.xlu0 %v364_v61 }
  0xa2   : > { %438 = vadd.xlane.f32.xlu1 %v381_v62  ;;  %406 = vadd.xlane.f32.xlu0 %v365_v63 }
  0xa6   : > { %344 = vadd.xlane.f32.xlu1 %v1966_v4  ;;  %312 = vadd.xlane.f32.xlu0 %v1969_v5 }
  0xaa   : > { %346 = vadd.xlane.f32.xlu1 %v1974_v6  ;;  %314 = vadd.xlane.f32.xlu0 %v1977_v7 }
  0xae   : > { %440 = vadd.xlane.f32.xlu1 %v382_v10  ;;  %408 = vadd.xlane.f32.xlu0 %v366_v11 }
  0xb2   : > { %442 = vadd.xlane.f32.xlu1 %v383_v14  ;;  %410 = vadd.xlane.f32.xlu0 %v367_v15 }
  0xb6   : > { %348 = vadd.xlane.f32.xlu1 %v1990_v16  ;;  %316 = vadd.xlane.f32.xlu0 %v1993_v17 }
  0xba   : > { %350 = vadd.xlane.f32.xlu1 %v1998_v18  ;;  %318 = vadd.xlane.f32.xlu0 %v2001_v19 }
  0xbe   : > { %444 = vadd.xlane.f32.xlu1 %v384_v20  ;;  %412 = vadd.xlane.f32.xlu0 %v368_v21 }
  0xc2   : > { %446 = vadd.xlane.f32.xlu1 %v385_v22  ;;  %414 = vadd.xlane.f32.xlu0 %v369_v23 }
  0xc6   : > { %352 = vadd.xlane.f32.xlu1 %v2014_v24  ;;  %320 = vadd.xlane.f32.xlu0 %v2017_v27 }
  0xca   : > { %354 = vadd.xlane.f32.xlu1 %v2022_v28  ;;  %322 = vadd.xlane.f32.xlu0 %v2025_v29 }
  0xce   : > { %448 = vadd.xlane.f32.xlu1 %v386_v32  ;;  %416 = vadd.xlane.f32.xlu0 %v370_v33 }
  0xd2   : > { %450 = vadd.xlane.f32.xlu1 %v387_v34  ;;  %418 = vadd.xlane.f32.xlu0 %v371_v35 }
  0xe3   : > { %v295_v36 = vpop.xlane.xlu1 %294  ;;  %v293_v37 = vpop.xlane.xlu0 %292 }
  0xe4   : > { %v2037_v40 = vmul.f32 0.0078125, %v293_v37  ;;  %v2039_v42 = vmul.f32 0.0078125, %v295_v36 }
  0xe6   : > { %v516_v48 = vmul.f32 %v2037_v40, %v2037_v40  ;;  %v517_v60 = vmul.f32 %v2039_v42, %v2039_v42 }
  0xe7   : > { %v327_v38 = vpop.xlane.xlu1 %326  ;;  %v325_v39 = vpop.xlane.xlu0 %324 }
  0xe8   : > { %v468_v41 = vmul.f32 0.0078125, %v325_v39  ;;  %v2041_v43 = vmul.f32 0.0078125, %v327_v38 }
  0xea   : > { %v532_v49 = vmul.f32 %v468_v41, %v468_v41  ;;  %v533_v61 = vmul.f32 %v2041_v43, %v2041_v43 }
  0xeb   : > { %v421_v44 = vpop.xlane.xlu1 %420  ;;  %v389_v47 = vpop.xlane.xlu0 %388 }
  0xec   : > { %v500_v52 = vmul.f32 0.0078125, %v421_v44  ;;  %v484_v53 = vmul.f32 0.0078125, %v389_v47 }
  0xee   : > { %v564_v54 = vsub.f32 %v500_v52, %v532_v49  ;;  %v548_v55 = vsub.f32 %v484_v53, %v516_v48 }
  0xef   : > { %v423_v62 = vpop.xlane.xlu1 %422  ;;  %v391_v63 = vpop.xlane.xlu0 %390 }
  0xf0   : > { %v596_v10 = vmax.f32 %v564_v54, 0.0  ;;  %v580_v11 = vmax.f32 %v548_v55, 0.0  ;;  %v501_v14 = vmul.f32 0.0078125, %v423_v62  ;;  %v485_v15 = vmul.f32 0.0078125, %v391_v63 }
  0xf1   : > { %v628_v62 = vsub.f32 %v1857_v3, %v468_v41 }
  0xf2   : > { %v660_v20 = vadd.f32 1e-05, %v596_v10  ;;  %v644_v21 = vadd.f32 1e-05, %v580_v11  ;;  %v565_v22 = vsub.f32 %v501_v14, %v533_v61  ;;  %v549_v23 = vsub.f32 %v485_v15, %v517_v60  ;;  %v2065_v14 = vld [vmem:[%s2423_s1] ss:$0 sm:$0xff] }
  0xf3   : > { %v329_v32 = vpop.xlane.xlu1 %328  ;;  %v297_v33 = vpop.xlane.xlu0 %296 }
  0xf4   : > { %1453 = vrsqrt.f32 %v660_v20  ;;  %v597_v34 = vmax.f32 %v565_v22, 0.0  ;;  %v581_v35 = vmax.f32 %v549_v23, 0.0  ;;  %v2049_v44 = vmul.f32 0.0078125, %v329_v32 }
  0xf5   : > { %1455 = vrsqrt.f32 %v644_v21  ;;  %v2051_v47 = vmul.f32 0.0078125, %v297_v33  ;;  %v612_v20 = vsub.f32 %v1849_v1, %v2037_v40  ;;  %v629_v1 = vsub.f32 %v1854_v2, %v2041_v43 }
  0xf6   : > { %v661_v36 = vadd.f32 1e-05, %v597_v34  ;;  %v645_v37 = vadd.f32 1e-05, %v581_v35  ;;  %v534_v54 = vmul.f32 %v2049_v44, %v2049_v44 }
  0xf7   : > { %v331_v38 = vpop.xlane.xlu1 %330  ;;  %v299_v39 = vpop.xlane.xlu0 %298  ;;  %v518_v55 = vmul.f32 %v2051_v47, %v2051_v47 }
  0xf8   : > { %1457 = vrsqrt.f32 %v661_v36  ;;  %v2053_v48 = vmul.f32 0.0078125, %v331_v38  ;;  %v2055_v49 = vmul.f32 0.0078125, %v299_v39  ;;  %v2076_v36 = vld [vmem:[%s2424_s2] ss:$0 sm:$0xff] }
  0xf9   : > { %1459 = vrsqrt.f32 %v645_v37 }
  0xfa   : > { %v535_v21 = vmul.f32 %v2053_v48, %v2053_v48  ;;  %v519_v22 = vmul.f32 %v2055_v49, %v2055_v49 }
  0xfb   : > { %v425_v52 = vpop.xlane.xlu1 %424  ;;  %v393_v53 = vpop.xlane.xlu0 %392 }
  0xfc   : > { %v502_v60 = vmul.f32 0.0078125, %v425_v52  ;;  %v486_v61 = vmul.f32 0.0078125, %v393_v53 }
  0xfe   : > { %v1454_v63 = vpop.eup %1453  ;;  %v566_v10 = vsub.f32 %v502_v60, %v534_v54  ;;  %v550_v11 = vsub.f32 %v486_v61, %v518_v55  ;;  %v613_v60 = vsub.f32 %v1846_v0, %v2039_v42 }
  0xff   : > { %v1456_v15 = vpop.eup %1455  ;;  %v427_v23 = vpop.xlane.xlu1 %426  ;;  %v724_v41 = vmul.f32 %v1454_v63, %v628_v62 }
 0x100   : > { %v395_v3 = vpop.xlane.xlu0 %394  ;;  %v598_v32 = vmax.f32 %v566_v10, 0.0  ;;  %v582_v33 = vmax.f32 %v550_v11, 0.0  ;;  %v503_v34 = vmul.f32 0.0078125, %v427_v23  ;;  %v708_v40 = vmul.f32 %v1456_v15, %v612_v20 }
 0x101   : > { %v487_v35 = vmul.f32 0.0078125, %v395_v3  ;;  %v763_v37 = vmul.f32 %v2065_v14, %v724_v41 }
 0x102   : > { %v1458_v38 = vpop.eup %1457  ;;  %v662_v39 = vadd.f32 1e-05, %v598_v32  ;;  %v646_v52 = vadd.f32 1e-05, %v582_v33  ;;  %v567_v53 = vsub.f32 %v503_v34, %v535_v21  ;;  %v747_v63 = vmul.f32 %v2065_v14, %v708_v40 }
 0x103   : > { %v551_v54 = vsub.f32 %v487_v35, %v519_v22  ;;  %v1460_v55 = vpop.eup %1459  ;;  %v333_v61 = vpop.xlane.xlu1 %332  ;;  %v802_v10 = vadd.f32 %v2076_v36, %v763_v37  ;;  %v725_v11 = vmul.f32 %v1458_v38, %v629_v1 }
 0x104   : > { %v301_v62 = vpop.xlane.xlu0 %300  ;;  %1461 = vrsqrt.f32 %v662_v39  ;;  %v599_v2 = vmax.f32 %v567_v53, 0.0  ;;  %v786_v15 = vadd.f32 %v2076_v36, %v747_v63  ;;  %v709_v20 = vmul.f32 %v1460_v55, %v613_v60 }
 0x105   : > { %v583_v43 = vmax.f32 %v551_v54, 0.0  ;;  %1463 = vrsqrt.f32 %v646_v52  ;;  %1320 = vmatprep.mubr.f32.mxu1 %v802_v10  ;;  %v764_v3 = vmul.f32 %v2065_v14, %v725_v11  ;;  %v2088_v41 = vmul.f32 0.0078125, %v333_v61 }
 0x106   : > { %v663_v21 = vadd.f32 1e-05, %v599_v2  ;;  %1296 = vmatprep.mubr.f32.mxu0 %v786_v15  ;;  %v748_v42 = vmul.f32 %v2065_v14, %v709_v20  ;;  %v2090_v32 = vmul.f32 0.0078125, %v301_v62  ;;  %v630_v54 = vsub.f32 %v1870_v8, %v2049_v44 }
 0x107   : > { %v647_v22 = vadd.f32 1e-05, %v583_v43  ;;  %v335_v23 = vpop.xlane.xlu1 %334  ;;  %v803_v34 = vadd.f32 %v2076_v36, %v764_v3  ;;  %v536_v38 = vmul.f32 %v2088_v41, %v2088_v41  ;;  %v614_v63 = vsub.f32 %v1873_v9, %v2051_v47 }
 0x108   : > { %v303_v0 = vpop.xlane.xlu0 %302  ;;  %1465 = vrsqrt.f32 %v663_v21  ;;  %v787_v33 = vadd.f32 %v2076_v36, %v748_v42  ;;  %v2094_v35 = vmul.f32 0.0078125, %v335_v23  ;;  %v520_v39 = vmul.f32 %v2090_v32, %v2090_v32 }
 0x109   : > { %1467 = vrsqrt.f32 %v647_v22  ;;  %v2096_v1 = vmul.f32 0.0078125, %v303_v0  ;;  %1321 = vmatmul.mubr.f32.vlgmr.msra.gmra.mrb[0].mxu1 %v803_v34  ;;  %v631_v44 = vsub.f32 %v1878_v12, %v2053_v48 }
 0x10a   : > { %1297 = vmatmul.mubr.f32.vlgmr.msra.gmra.mrb[0].mxu0 %v787_v33  ;;  %v537_v10 = vmul.f32 %v2094_v35, %v2094_v35 }
 0x10b   : > { %v429_v40 = vpop.xlane.xlu1 %428  ;;  %v521_v11 = vmul.f32 %v2096_v1, %v2096_v1 }
 0x10c   : > { %v397_v37 = vpop.xlane.xlu0 %396  ;;  %v504_v52 = vmul.f32 0.0078125, %v429_v40  ;;  %v615_v40 = vsub.f32 %v1881_v13, %v2055_v49 }
 0x10d   : > { %v488_v53 = vmul.f32 0.0078125, %v397_v37 }
 0x10e   : > { %v1462_v55 = vpop.eup %1461  ;;  %v568_v60 = vsub.f32 %v504_v52, %v536_v38 }
 0x10f   : > { %v552_v61 = vsub.f32 %v488_v53, %v520_v39  ;;  %v1464_v62 = vpop.eup %1463  ;;  %v431_v2 = vpop.xlane.xlu1 %430  ;;  %v726_v15 = vmul.f32 %v1462_v55, %v630_v54 }
 0x110   : > { %v399_v43 = vpop.xlane.xlu0 %398  ;;  %v600_v20 = vmax.f32 %v568_v60, 0.0  ;;  %v505_v22 = vmul.f32 0.0078125, %v431_v2  ;;  %v710_v23 = vmul.f32 %v1464_v62, %v614_v63 }
 0x111   : > { %v584_v21 = vmax.f32 %v552_v61, 0.0  ;;  %v489_v8 = vmul.f32 0.0078125, %v399_v43  ;;  %v765_v0 = vmul.f32 %v2065_v14, %v726_v15 }
 0x112   : > { %v1466_v9 = vpop.eup %1465  ;;  %v664_v47 = vadd.f32 1e-05, %v600_v20  ;;  %v569_v3 = vsub.f32 %v505_v22, %v537_v10  ;;  %v749_v39 = vmul.f32 %v2065_v14, %v710_v23 }
 0x113   : > { %v648_v42 = vadd.f32 1e-05, %v584_v21  ;;  %v553_v33 = vsub.f32 %v489_v8, %v521_v11  ;;  %v1468_v34 = vpop.eup %1467  ;;  %v337_v37 = vpop.xlane.xlu1 %336  ;;  %v804_v52 = vadd.f32 %v2076_v36, %v765_v0  ;;  %v727_v53 = vmul.f32 %v1466_v9, %v631_v44 }
 0x114   : > { %v305_v38 = vpop.xlane.xlu0 %304  ;;  %1469 = vrsqrt.f32 %v664_v47  ;;  %v601_v12 = vmax.f32 %v569_v3, 0.0  ;;  %v788_v54 = vadd.f32 %v2076_v36, %v749_v39  ;;  %v711_v55 = vmul.f32 %v1468_v34, %v615_v40 }
 0x115   : > { %v585_v48 = vmax.f32 %v553_v33, 0.0  ;;  %1471 = vrsqrt.f32 %v648_v42  ;;  %1323 = vmatprep.mubr.f32.mxu1 %v804_v52  ;;  %v766_v63 = vmul.f32 %v2065_v14, %v727_v53  ;;  %v2120_v10 = vmul.f32 0.0078125, %v337_v37 }
 0x116   : > { %v665_v60 = vadd.f32 1e-05, %v601_v12  ;;  %1299 = vmatprep.mubr.f32.mxu0 %v788_v54  ;;  %v750_v49 = vmul.f32 %v2065_v14, %v711_v55  ;;  %v2122_v11 = vmul.f32 0.0078125, %v305_v38  ;;  %v632_v9 = vsub.f32 %v1894_v25, %v2088_v41 }
 0x117   : > { %v649_v61 = vadd.f32 1e-05, %v585_v48  ;;  %v339_v62 = vpop.xlane.xlu1 %338  ;;  %v805_v43 = vadd.f32 %v2076_v36, %v766_v63  ;;  %v538_v8 = vmul.f32 %v2120_v10, %v2120_v10  ;;  %v616_v34 = vsub.f32 %v1897_v26, %v2090_v32 }
 0x118   : > { %v307_v13 = vpop.xlane.xlu0 %306  ;;  %1473 = vrsqrt.f32 %v665_v60  ;;  %v789_v2 = vadd.f32 %v2076_v36, %v750_v49  ;;  %v2126_v15 = vmul.f32 0.0078125, %v339_v62  ;;  %v522_v44 = vmul.f32 %v2122_v11, %v2122_v11 }
 0x119   : > { %1475 = vrsqrt.f32 %v649_v61  ;;  %v2128_v20 = vmul.f32 0.0078125, %v307_v13  ;;  %1324 = vmatmul.mubr.f32.gmra.mrb[2].mxu1 %v805_v43  ;;  %v633_v41 = vsub.f32 %v1902_v30, %v2094_v35  ;;  %v617_v49 = vsub.f32 %v1905_v31, %v2096_v1 }
 0x11a   : > { %1300 = vmatmul.mubr.f32.gmra.mrb[2].mxu0 %v789_v2  ;;  %v539_v40 = vmul.f32 %v2126_v15, %v2126_v15 }
 0x11b   : > { %v433_v21 = vpop.xlane.xlu1 %432  ;;  %v523_v37 = vmul.f32 %v2128_v20, %v2128_v20 }
 0x11c   : > { %v401_v22 = vpop.xlane.xlu0 %400  ;;  %v506_v23 = vmul.f32 0.0078125, %v433_v21 }
 0x11d   : > { %v490_v0 = vmul.f32 0.0078125, %v401_v22 }
 0x11e   : > { %v1470_v47 = vpop.eup %1469  ;;  %v570_v42 = vsub.f32 %v506_v23, %v538_v8 }
 0x11f   : > { %v554_v3 = vsub.f32 %v490_v0, %v522_v44  ;;  %v1472_v33 = vpop.eup %1471  ;;  %v435_v38 = vpop.xlane.xlu1 %434  ;;  %v728_v52 = vmul.f32 %v1470_v47, %v632_v9 }
 0x120   : > { %v403_v39 = vpop.xlane.xlu0 %402  ;;  %v602_v53 = vmax.f32 %v570_v42, 0.0  ;;  %v507_v48 = vmul.f32 0.0078125, %v435_v38  ;;  %v712_v54 = vmul.f32 %v1472_v33, %v616_v34 }
 0x121   : > { %v586_v12 = vmax.f32 %v554_v3, 0.0  ;;  %v491_v25 = vmul.f32 0.0078125, %v403_v39  ;;  %v767_v55 = vmul.f32 %v2065_v14, %v728_v52 }
 0x122   : > { %v1474_v26 = vpop.eup %1473  ;;  %v666_v32 = vadd.f32 1e-05, %v602_v53  ;;  %v571_v61 = vsub.f32 %v507_v48, %v539_v40  ;;  %v751_v43 = vmul.f32 %v2065_v14, %v712_v54 }
 0x123   : > { %v650_v60 = vadd.f32 1e-05, %v586_v12  ;;  %v555_v62 = vsub.f32 %v491_v25, %v523_v37  ;;  %v1476_v13 = vpop.eup %1475  ;;  %v341_v63 = vpop.xlane.xlu1 %340  ;;  %v806_v21 = vadd.f32 %v2076_v36, %v767_v55  ;;  %v729_v22 = vmul.f32 %v1474_v26, %v633_v41 }
 0x124   : > { %v309_v2 = vpop.xlane.xlu0 %308  ;;  %1477 = vrsqrt.f32 %v666_v32  ;;  %v603_v30 = vmax.f32 %v571_v61, 0.0  ;;  %v790_v8 = vadd.f32 %v2076_v36, %v751_v43  ;;  %v713_v44 = vmul.f32 %v1476_v13, %v617_v49 }
 0x125   : > { %v587_v35 = vmax.f32 %v555_v62, 0.0  ;;  %1479 = vrsqrt.f32 %v650_v60  ;;  %1326 = vmatprep.mubr.f32.mxu1 %v806_v21  ;;  %v768_v47 = vmul.f32 %v2065_v14, %v729_v22  ;;  %v2152_v42 = vmul.f32 0.0078125, %v341_v63 }
 0x126   : > { %v667_v23 = vadd.f32 1e-05, %v603_v30  ;;  %1302 = vmatprep.mubr.f32.mxu0 %v790_v8  ;;  %v752_v1 = vmul.f32 %v2065_v14, %v713_v44  ;;  %v2154_v3 = vmul.f32 0.0078125, %v309_v2  ;;  %v634_v25 = vsub.f32 %v1918_v45, %v2120_v10 }
 0x127   : > { %v651_v0 = vadd.f32 1e-05, %v587_v35  ;;  %v343_v9 = vpop.xlane.xlu1 %342  ;;  %v807_v34 = vadd.f32 %v2076_v36, %v768_v47  ;;  %v540_v52 = vmul.f32 %v2152_v42, %v2152_v42  ;;  %v618_v32 = vsub.f32 %v1921_v46, %v2122_v11 }
 0x128   : > { %v311_v31 = vpop.xlane.xlu0 %310  ;;  %1481 = vrsqrt.f32 %v667_v23  ;;  %v791_v33 = vadd.f32 %v2076_v36, %v752_v1  ;;  %v2158_v40 = vmul.f32 0.0078125, %v343_v9  ;;  %v524_v53 = vmul.f32 %v2154_v3, %v2154_v3 }
 0x129   : > { %1483 = vrsqrt.f32 %v651_v0  ;;  %v2160_v37 = vmul.f32 0.0078125, %v311_v31  ;;  %1327 = vmatmul.mubr.f32.gmra.mrb[4].mxu1 %v807_v34  ;;  %v635_v10 = vsub.f32 %v1926_v50, %v2126_v15  ;;  %v619_v23 = vsub.f32 %v1929_v51, %v2128_v20 }
 0x12a   : > { %1303 = vmatmul.mubr.f32.gmra.mrb[4].mxu0 %v791_v33  ;;  %v541_v60 = vmul.f32 %v2158_v40, %v2158_v40 }
 0x12b   : > { %v437_v38 = vpop.xlane.xlu1 %436  ;;  %v525_v61 = vmul.f32 %v2160_v37, %v2160_v37 }
 0x12c   : > { %v405_v39 = vpop.xlane.xlu0 %404  ;;  %v508_v12 = vmul.f32 0.0078125, %v437_v38 }
 0x12d   : > { %v492_v48 = vmul.f32 0.0078125, %v405_v39 }
 0x12e   : > { %v1478_v41 = vpop.eup %1477  ;;  %v572_v54 = vsub.f32 %v508_v12, %v540_v52 }
 0x12f   : > { %v556_v55 = vsub.f32 %v492_v48, %v524_v53  ;;  %v1480_v26 = vpop.eup %1479  ;;  %v439_v62 = vpop.xlane.xlu1 %438  ;;  %v730_v49 = vmul.f32 %v1478_v41, %v634_v25 }
 0x130   : > { %v407_v13 = vpop.xlane.xlu0 %406  ;;  %v604_v63 = vmax.f32 %v572_v54, 0.0  ;;  %v509_v43 = vmul.f32 0.0078125, %v439_v62  ;;  %v714_v21 = vmul.f32 %v1480_v26, %v618_v32 }
 0x131   : > { %v588_v2 = vmax.f32 %v556_v55, 0.0  ;;  %v493_v45 = vmul.f32 0.0078125, %v407_v13  ;;  %v769_v22 = vmul.f32 %v2065_v14, %v730_v49  ;;  %v636_v49 = vsub.f32 %v1942_v56, %v2152_v42 }
 0x132   : > { %v1482_v46 = vpop.eup %1481  ;;  %v668_v11 = vadd.f32 1e-05, %v604_v63  ;;  %v573_v35 = vsub.f32 %v509_v43, %v541_v60  ;;  %v753_v31 = vmul.f32 %v2065_v14, %v714_v21  ;;  %v637_v42 = vsub.f32 %v1950_v58, %v2158_v40 }
 0x133   : > { %v652_v30 = vadd.f32 1e-05, %v588_v2  ;;  %v557_v8 = vsub.f32 %v493_v45, %v525_v61  ;;  %v1484_v44 = vpop.eup %1483  ;;  %v345_v0 = vpop.xlane.xlu1 %344  ;;  %v808_v1 = vadd.f32 %v2076_v36, %v769_v22  ;;  %v731_v47 = vmul.f32 %v1482_v46, %v635_v10 }
 0x134   : > { %v313_v9 = vpop.xlane.xlu0 %312  ;;  %1485 = vrsqrt.f32 %v668_v11  ;;  %v605_v50 = vmax.f32 %v573_v35, 0.0  ;;  %v792_v33 = vadd.f32 %v2076_v36, %v753_v31  ;;  %v715_v34 = vmul.f32 %v1484_v44, %v619_v23 }
 0x135   : > { %v589_v15 = vmax.f32 %v557_v8, 0.0  ;;  %1487 = vrsqrt.f32 %v652_v30  ;;  %1329 = vmatprep.mubr.f32.mxu1 %v808_v1  ;;  %v770_v53 = vmul.f32 %v2065_v14, %v731_v47  ;;  %v2184_v12 = vmul.f32 0.0078125, %v345_v0 }
 0x136   : > { %v669_v38 = vadd.f32 1e-05, %v605_v50  ;;  %1305 = vmatprep.mubr.f32.mxu0 %v792_v33  ;;  %v754_v20 = vmul.f32 %v2065_v14, %v715_v34  ;;  %v2186_v48 = vmul.f32 0.0078125, %v313_v9  ;;  %v620_v10 = vsub.f32 %v1945_v57, %v2154_v3 }
 0x137   : > { %v653_v39 = vadd.f32 1e-05, %v589_v15  ;;  %v347_v52 = vpop.xlane.xlu1 %346  ;;  %v809_v41 = vadd.f32 %v2076_v36, %v770_v53  ;;  %v542_v60 = vmul.f32 %v2184_v12, %v2184_v12  ;;  %v621_v50 = vsub.f32 %v1953_v59, %v2160_v37 }
 0x138   : > { %v315_v51 = vpop.xlane.xlu0 %314  ;;  %1489 = vrsqrt.f32 %v669_v38  ;;  %v793_v25 = vadd.f32 %v2076_v36, %v754_v20  ;;  %v2190_v54 = vmul.f32 0.0078125, %v347_v52  ;;  %v526_v61 = vmul.f32 %v2186_v48, %v2186_v48 }
 0x139   : > { %1491 = vrsqrt.f32 %v653_v39  ;;  %v2192_v55 = vmul.f32 0.0078125, %v315_v51  ;;  %1330 = vmatmul.mubr.f32.gmra.mrb[6].mxu1 %v809_v41 }
 0x13a   : > { %1306 = vmatmul.mubr.f32.gmra.mrb[6].mxu0 %v793_v25  ;;  %v543_v21 = vmul.f32 %v2190_v54, %v2190_v54 }
 0x13b   : > { %v441_v26 = vpop.xlane.xlu1 %440  ;;  %v527_v22 = vmul.f32 %v2192_v55, %v2192_v55 }
 0x13c   : > { %v409_v32 = vpop.xlane.xlu0 %408  ;;  %v510_v62 = vmul.f32 0.0078125, %v441_v26 }
 0x13d   : > { %v494_v13 = vmul.f32 0.0078125, %v409_v32 }
 0x13e   : > { %v1486_v63 = vpop.eup %1485  ;;  %v574_v2 = vsub.f32 %v510_v62, %v542_v60 }
 0x13f   : > { %v558_v43 = vsub.f32 %v494_v13, %v526_v61  ;;  %v1488_v45 = vpop.eup %1487  ;;  %v443_v46 = vpop.xlane.xlu1 %442  ;;  %v732_v30 = vmul.f32 %v1486_v63, %v636_v49 }
 0x140   : > { %v411_v11 = vpop.xlane.xlu0 %410  ;;  %v606_v35 = vmax.f32 %v574_v2, 0.0  ;;  %v511_v44 = vmul.f32 0.0078125, %v443_v46  ;;  %v716_v23 = vmul.f32 %v1488_v45, %v620_v10 }
 0x141   : > { %v590_v8 = vmax.f32 %v558_v43, 0.0  ;;  %v495_v56 = vmul.f32 0.0078125, %v411_v11  ;;  %v771_v0 = vmul.f32 %v2065_v14, %v732_v30 }
 0x142   : > { %v1490_v57 = vpop.eup %1489  ;;  %v670_v3 = vadd.f32 1e-05, %v606_v35  ;;  %v575_v31 = vsub.f32 %v511_v44, %v543_v21  ;;  %v755_v34 = vmul.f32 %v2065_v14, %v716_v23  ;;  %v638_v21 = vsub.f32 %v1966_v4, %v2184_v12 }
 0x143   : > { %v654_v9 = vadd.f32 1e-05, %v590_v8  ;;  %v559_v1 = vsub.f32 %v495_v56, %v527_v22  ;;  %v1492_v47 = vpop.eup %1491  ;;  %v349_v15 = vpop.xlane.xlu1 %348  ;;  %v810_v38 = vadd.f32 %v2076_v36, %v771_v0  ;;  %v733_v39 = vmul.f32 %v1490_v57, %v637_v42 }
 0x144   : > { %v317_v33 = vpop.xlane.xlu0 %316  ;;  %1493 = vrsqrt.f32 %v670_v3  ;;  %v607_v58 = vmax.f32 %v575_v31, 0.0  ;;  %v794_v52 = vadd.f32 %v2076_v36, %v755_v34  ;;  %v717_v51 = vmul.f32 %v1492_v47, %v621_v50 }
 0x145   : > { %v591_v40 = vmax.f32 %v559_v1, 0.0  ;;  %1495 = vrsqrt.f32 %v654_v9  ;;  %1332 = vmatprep.mubr.f32.mxu1 %v810_v38  ;;  %v772_v41 = vmul.f32 %v2065_v14, %v733_v39  ;;  %v2216_v26 = vmul.f32 0.0078125, %v349_v15 }
 0x146   : > { %v671_v20 = vadd.f32 1e-05, %v607_v58  ;;  %1308 = vmatprep.mubr.f32.mxu0 %v794_v52  ;;  %v756_v37 = vmul.f32 %v2065_v14, %v717_v51  ;;  %v2218_v32 = vmul.f32 0.0078125, %v317_v33  ;;  %v622_v35 = vsub.f32 %v1969_v5, %v2186_v48 }
 0x147   : > { %v655_v53 = vadd.f32 1e-05, %v591_v40  ;;  %v351_v25 = vpop.xlane.xlu1 %350  ;;  %v811_v61 = vadd.f32 %v2076_v36, %v772_v41  ;;  %v544_v2 = vmul.f32 %v2216_v26, %v2216_v26  ;;  %v639_v12 = vsub.f32 %v1974_v6, %v2190_v54 }
 0x148   : > { %v319_v59 = vpop.xlane.xlu0 %318  ;;  %1497 = vrsqrt.f32 %v671_v20  ;;  %v795_v60 = vadd.f32 %v2076_v36, %v756_v37  ;;  %v2222_v62 = vmul.f32 0.0078125, %v351_v25  ;;  %v528_v43 = vmul.f32 %v2218_v32, %v2218_v32 }
 0x149   : > { %1499 = vrsqrt.f32 %v655_v53  ;;  %v2224_v13 = vmul.f32 0.0078125, %v319_v59  ;;  %1333 = vmatmul.mubr.f32.gmra.mrb[8].mxu1 %v811_v61  ;;  %v623_v33 = vsub.f32 %v1977_v7, %v2192_v55 }
 0x14a   : > { %1309 = vmatmul.mubr.f32.gmra.mrb[8].mxu0 %v795_v60  ;;  %v545_v8 = vmul.f32 %v2222_v62, %v2222_v62 }
 0x14b   : > { %v445_v49 = vpop.xlane.xlu1 %444  ;;  %v529_v44 = vmul.f32 %v2224_v13, %v2224_v13 }
 0x14c   : > { %v413_v63 = vpop.xlane.xlu0 %412  ;;  %v512_v45 = vmul.f32 0.0078125, %v445_v49 }
 0x14d   : > { %v496_v10 = vmul.f32 0.0078125, %v413_v63 }
 0x14e   : > { %v1494_v22 = vpop.eup %1493  ;;  %v576_v46 = vsub.f32 %v512_v45, %v544_v2 }
 0x14f   : > { %v560_v11 = vsub.f32 %v496_v10, %v528_v43  ;;  %v1496_v30 = vpop.eup %1495  ;;  %v447_v56 = vpop.xlane.xlu1 %446  ;;  %v734_v23 = vmul.f32 %v1494_v22, %v638_v21 }
 0x150   : > { %v415_v42 = vpop.xlane.xlu0 %414  ;;  %v608_v0 = vmax.f32 %v576_v46, 0.0  ;;  %v513_v3 = vmul.f32 0.0078125, %v447_v56  ;;  %v718_v9 = vmul.f32 %v1496_v30, %v622_v35  ;;  %v640_v46 = vsub.f32 %v1990_v16, %v2216_v26 }
 0x151   : > { %v592_v57 = vmax.f32 %v560_v11, 0.0  ;;  %v497_v4 = vmul.f32 0.0078125, %v415_v42  ;;  %v773_v31 = vmul.f32 %v2065_v14, %v734_v23  ;;  %v641_v26 = vsub.f32 %v1998_v18, %v2222_v62 }
 0x152   : > { %v1498_v5 = vpop.eup %1497  ;;  %v672_v48 = vadd.f32 1e-05, %v608_v0  ;;  %v577_v47 = vsub.f32 %v513_v3, %v545_v8  ;;  %v757_v39 = vmul.f32 %v2065_v14, %v718_v9  ;;  %v625_v9 = vsub.f32 %v2001_v19, %v2224_v13 }
 0x153   : > { %v656_v1 = vadd.f32 1e-05, %v592_v57  ;;  %v561_v50 = vsub.f32 %v497_v4, %v529_v44  ;;  %v1500_v15 = vpop.eup %1499  ;;  %v353_v34 = vpop.xlane.xlu1 %352  ;;  %v812_v58 = vadd.f32 %v2076_v36, %v773_v31  ;;  %v735_v40 = vmul.f32 %v1498_v5, %v639_v12 }
 0x154   : > { %v321_v38 = vpop.xlane.xlu0 %320  ;;  %1501 = vrsqrt.f32 %v672_v48  ;;  %v609_v6 = vmax.f32 %v577_v47, 0.0  ;;  %v796_v52 = vadd.f32 %v2076_v36, %v757_v39  ;;  %v719_v51 = vmul.f32 %v1500_v15, %v623_v33 }
 0x155   : > { %v593_v54 = vmax.f32 %v561_v50, 0.0  ;;  %1503 = vrsqrt.f32 %v656_v1  ;;  %1335 = vmatprep.mubr.f32.mxu1 %v812_v58  ;;  %v774_v59 = vmul.f32 %v2065_v14, %v735_v40  ;;  %v2248_v37 = vmul.f32 0.0078125, %v353_v34 }
 0x156   : > { %v673_v20 = vadd.f32 1e-05, %v609_v6  ;;  %1311 = vmatprep.mubr.f32.mxu0 %v796_v52  ;;  %v758_v55 = vmul.f32 %v2065_v14, %v719_v51  ;;  %v2250_v41 = vmul.f32 0.0078125, %v321_v38  ;;  %v624_v44 = vsub.f32 %v1993_v17, %v2218_v32 }
 0x157   : > { %v657_v53 = vadd.f32 1e-05, %v593_v54  ;;  %v355_v25 = vpop.xlane.xlu1 %354  ;;  %v813_v61 = vadd.f32 %v2076_v36, %v774_v59  ;;  %v546_v45 = vmul.f32 %v2248_v37, %v2248_v37  ;;  %v642_v52 = vsub.f32 %v2014_v24, %v2248_v37 }
 0x158   : > { %v323_v7 = vpop.xlane.xlu0 %322  ;;  %1505 = vrsqrt.f32 %v673_v20  ;;  %v797_v60 = vadd.f32 %v2076_v36, %v758_v55  ;;  %v2254_v49 = vmul.f32 0.0078125, %v355_v25  ;;  %v530_v10 = vmul.f32 %v2250_v41, %v2250_v41 }
 0x159   : > { %1507 = vrsqrt.f32 %v657_v53  ;;  %v2256_v63 = vmul.f32 0.0078125, %v323_v7  ;;  %1336 = vmatmul.mubr.f32.gmra.mrb[10].mxu1 %v813_v61  ;;  %v626_v20 = vsub.f32 %v2017_v27, %v2250_v41 }
 0x15a   : > { %1312 = vmatmul.mubr.f32.gmra.mrb[10].mxu0 %v797_v60  ;;  %v547_v56 = vmul.f32 %v2254_v49, %v2254_v49  ;;  %v643_v55 = vsub.f32 %v2022_v28, %v2254_v49 }
 0x15b   : > { %v449_v2 = vpop.xlane.xlu1 %448  ;;  %v531_v42 = vmul.f32 %v2256_v63, %v2256_v63  ;;  %v627_v61 = vsub.f32 %v2025_v29, %v2256_v63  ;;  %v2301_v63 = vld [vmem:[%s2426_s4] ss:$0 sm:$0xff] }
 0x15c   : > { %v417_v43 = vpop.xlane.xlu0 %416  ;;  %v514_v21 = vmul.f32 0.0078125, %v449_v2 }
 0x15d   : > { %v498_v22 = vmul.f32 0.0078125, %v417_v43 }
 0x15e   : > { %v1502_v11 = vpop.eup %1501  ;;  %v578_v30 = vsub.f32 %v514_v21, %v546_v45 }
 0x15f   : > { %v562_v35 = vsub.f32 %v498_v22, %v530_v10  ;;  %v1504_v8 = vpop.eup %1503  ;;  %v451_v23 = vpop.xlane.xlu1 %450  ;;  %v736_v57 = vmul.f32 %v1502_v11, %v640_v46 }
 0x160   : > { %v419_v0 = vpop.xlane.xlu0 %418  ;;  %v610_v3 = vmax.f32 %v578_v30, 0.0  ;;  %v515_v12 = vmul.f32 0.0078125, %v451_v23  ;;  %v720_v17 = vmul.f32 %v1504_v8, %v624_v44 }
 0x161   : > { %v594_v4 = vmax.f32 %v562_v35, 0.0  ;;  %v499_v16 = vmul.f32 0.0078125, %v419_v0  ;;  %v775_v32 = vmul.f32 %v2065_v14, %v736_v57 }
 0x162   : > { %v1506_v31 = vpop.eup %1505  ;;  %v674_v5 = vadd.f32 1e-05, %v610_v3  ;;  %v579_v1 = vsub.f32 %v515_v12, %v547_v56  ;;  %v759_v15 = vmul.f32 %v2065_v14, %v720_v17 }
 0x163   : > { %v658_v48 = vadd.f32 1e-05, %v594_v4  ;;  %v563_v47 = vsub.f32 %v499_v16, %v531_v42  ;;  %v1508_v50 = vpop.eup %1507  ;;  %v814_v33 = vadd.f32 %v2076_v36, %v775_v32  ;;  %v737_v34 = vmul.f32 %v1506_v31, %v641_v26 }
 0x164   : > { %1509 = vrsqrt.f32 %v674_v5  ;;  %v611_v38 = vmax.f32 %v579_v1, 0.0  ;;  %v721_v62 = vmul.f32 %v1508_v50, %v625_v9  ;;  %v798_v19 = vadd.f32 %v2076_v36, %v759_v15 }
 0x165   : > { %v595_v18 = vmax.f32 %v563_v47, 0.0  ;;  %1511 = vrsqrt.f32 %v658_v48  ;;  %1338 = vmatprep.mubr.f32.mxu1 %v814_v33  ;;  %v776_v13 = vmul.f32 %v2065_v14, %v737_v34 }
 0x166   : > { %v675_v39 = vadd.f32 1e-05, %v611_v38  ;;  %v760_v40 = vmul.f32 %v2065_v14, %v721_v62  ;;  %1314 = vmatprep.mubr.f32.mxu0 %v798_v19 }
 0x167   : > { %v659_v58 = vadd.f32 1e-05, %v595_v18  ;;  %v815_v6 = vadd.f32 %v2076_v36, %v776_v13 }
 0x168   : > { %1513 = vrsqrt.f32 %v675_v39  ;;  %v799_v54 = vadd.f32 %v2076_v36, %v760_v40 }
 0x169   : > { %1515 = vrsqrt.f32 %v659_v58  ;;  %1339 = vmatmul.mubr.f32.gmra.mrb[12].mxu1 %v815_v6 }
 0x16a   : > { %1315 = vmatmul.mubr.f32.gmra.mrb[12].mxu0 %v799_v54 }
 0x16e   : > { %v1510_v51 = vpop.eup %1509 }
 0x16f   : > { %v1512_v53 = vpop.eup %1511  ;;  %v738_v25 = vmul.f32 %v1510_v51, %v642_v52 }
 0x170   : > { %v722_v7 = vmul.f32 %v1512_v53, %v626_v20 }
 0x171   : > { %v777_v59 = vmul.f32 %v2065_v14, %v738_v25 }
 0x172   : > { %v1514_v60 = vpop.eup %1513  ;;  %v761_v2 = vmul.f32 %v2065_v14, %v722_v7 }
 0x173   : > { %v1516_v43 = vpop.eup %1515  ;;  %v816_v24 = vadd.f32 %v2076_v36, %v777_v59  ;;  %v739_v37 = vmul.f32 %v1514_v60, %v643_v55 }
 0x174   : > { %v800_v27 = vadd.f32 %v2076_v36, %v761_v2  ;;  %v723_v41 = vmul.f32 %v1516_v43, %v627_v61 }
 0x175   : > { %1341 = vmatprep.mubr.f32.mxu1 %v816_v24  ;;  %v778_v45 = vmul.f32 %v2065_v14, %v739_v37 }
 0x176   : > { %1317 = vmatprep.mubr.f32.mxu0 %v800_v27  ;;  %v762_v28 = vmul.f32 %v2065_v14, %v723_v41 }
 0x177   : > { %v817_v49 = vadd.f32 %v2076_v36, %v778_v45 }
 0x178   : > { %v801_v29 = vadd.f32 %v2076_v36, %v762_v28 }
 0x179   : > { %1342 = vmatmul.mubr.f32.gmra.mrb[14].mxu1 %v817_v49 }
 0x17a   : > { %1318 = vmatmul.mubr.f32.gmra.mrb[14].mxu0 %v801_v29 }
 0x1dc   : > { %v1322_v21 = vpop.f32.mrb[0].mxu1 }
 0x1dd   : > { %v1298_v10 = vpop.f32.mrb[0].mxu0  ;;  %v993_v46 = vadd.f32 %v1322_v21, %v2301_v63  ;;  %v987_v30 = vpop.f32.mrb[1].mxu1 }
 0x1de   : > { %v913_v22 = vadd.f32 %v1298_v10, %v2301_v63  ;;  %v907_v11 = vpop.f32.mrb[1].mxu0  ;;  %v988_v35 = vadd.f32 %v2301_v63, %v987_v30 }
 0x1df   : > { %v908_v14 = vadd.f32 %v2301_v63, %v907_v11  ;;  %1083 = vst [vmem:[%s2309_s15 + $0x88] sm:$0xff] %v993_v46 }
 0x1e0   : > { %1067 = vst [vmem:[%s2309_s15 + $0x8] sm:$0xff] %v913_v22  ;;  %1082 = vst [vmem:[%s2309_s15 + $0x80] sm:$0xff] %v988_v35 }
 0x1e1   : > { %1066 = vst [vmem:[%s2309_s15] sm:$0xff] %v908_v14 }
 0x1ec   : > { %v1325_v8 = vpop.f32.mrb[2].mxu1 }
 0x1ed   : > { %v1301_v36 = vpop.f32.mrb[2].mxu0  ;;  %v1003_v56 = vadd.f32 %v1325_v8, %v2301_v63  ;;  %v997_v23 = vpop.f32.mrb[3].mxu1 }
 0x1ee   : > { %v923_v44 = vadd.f32 %v1301_v36, %v2301_v63  ;;  %v917_v42 = vpop.f32.mrb[3].mxu0  ;;  %v998_v57 = vadd.f32 %v2301_v63, %v997_v23 }
 0x1ef   : > { %v918_v0 = vadd.f32 %v2301_v63, %v917_v42  ;;  %1085 = vst [vmem:[%s2309_s15 + $0x98] sm:$0xff] %v1003_v56 }
 0x1f0   : > { %1069 = vst [vmem:[%s2309_s15 + $0x18] sm:$0xff] %v923_v44  ;;  %1084 = vst [vmem:[%s2309_s15 + $0x90] sm:$0xff] %v998_v57 }
 0x1f1   : > { %1068 = vst [vmem:[%s2309_s15 + $0x10] sm:$0xff] %v918_v0 }
 0x1fc   : > { %v1328_v4 = vpop.f32.mrb[4].mxu1 }
 0x1fd   : > { %v1304_v3 = vpop.f32.mrb[4].mxu0  ;;  %v1013_v16 = vadd.f32 %v1328_v4, %v2301_v63  ;;  %v1007_v9 = vpop.f32.mrb[5].mxu1 }
 0x1fe   : > { %v933_v12 = vadd.f32 %v1304_v3, %v2301_v63  ;;  %v927_v26 = vpop.f32.mrb[5].mxu0  ;;  %v1008_v32 = vadd.f32 %v2301_v63, %v1007_v9 }
 0x1ff   : > { %v928_v17 = vadd.f32 %v2301_v63, %v927_v26  ;;  %1087 = vst [vmem:[%s2309_s15 + $0xa8] sm:$0xff] %v1013_v16 }
 0x200   : > { %1071 = vst [vmem:[%s2309_s15 + $0x28] sm:$0xff] %v933_v12  ;;  %1086 = vst [vmem:[%s2309_s15 + $0xa0] sm:$0xff] %v1008_v32 }
 0x201   : > { %1070 = vst [vmem:[%s2309_s15 + $0x20] sm:$0xff] %v928_v17 }
 0x20c   : > { %v1331_v5 = vpop.f32.mrb[6].mxu1 }
 0x20d   : > { %v1307_v31 = vpop.f32.mrb[6].mxu0  ;;  %v1023_v1 = vadd.f32 %v1331_v5, %v2301_v63  ;;  %v1017_v50 = vpop.f32.mrb[7].mxu1 }
 0x20e   : > { %v943_v48 = vadd.f32 %v1307_v31, %v2301_v63  ;;  %v937_v47 = vpop.f32.mrb[7].mxu0  ;;  %v1018_v33 = vadd.f32 %v2301_v63, %v1017_v50 }
 0x20f   : > { %v938_v15 = vadd.f32 %v2301_v63, %v937_v47  ;;  %1089 = vst [vmem:[%s2309_s15 + $0xb8] sm:$0xff] %v1023_v1 }
 0x210   : > { %1073 = vst [vmem:[%s2309_s15 + $0x38] sm:$0xff] %v943_v48  ;;  %1088 = vst [vmem:[%s2309_s15 + $0xb0] sm:$0xff] %v1018_v33 }
 0x211   : > { %1072 = vst [vmem:[%s2309_s15 + $0x30] sm:$0xff] %v938_v15 }
 0x21c   : > { %v1334_v38 = vpop.f32.mrb[8].mxu1 }
 0x21d   : > { %v1310_v34 = vpop.f32.mrb[8].mxu0  ;;  %v1033_v62 = vadd.f32 %v1334_v38, %v2301_v63  ;;  %v1027_v13 = vpop.f32.mrb[9].mxu1 }
 0x21e   : > { %v953_v18 = vadd.f32 %v1310_v34, %v2301_v63  ;;  %v947_v19 = vpop.f32.mrb[9].mxu0  ;;  %v1028_v58 = vadd.f32 %v2301_v63, %v1027_v13 }
 0x21f   : > { %v948_v39 = vadd.f32 %v2301_v63, %v947_v19  ;;  %1091 = vst [vmem:[%s2309_s15 + $0xc8] sm:$0xff] %v1033_v62 }
 0x220   : > { %1075 = vst [vmem:[%s2309_s15 + $0x48] sm:$0xff] %v953_v18  ;;  %1090 = vst [vmem:[%s2309_s15 + $0xc0] sm:$0xff] %v1028_v58 }
 0x221   : > { %1074 = vst [vmem:[%s2309_s15 + $0x40] sm:$0xff] %v948_v39 }
 0x22c   : > { %v1337_v6 = vpop.f32.mrb[10].mxu1 }
 0x22d   : > { %v1313_v40 = vpop.f32.mrb[10].mxu0  ;;  %v1043_v52 = vadd.f32 %v1337_v6, %v2301_v63  ;;  %v1037_v20 = vpop.f32.mrb[11].mxu1 }
 0x22e   : > { %v963_v54 = vadd.f32 %v1313_v40, %v2301_v63  ;;  %v957_v51 = vpop.f32.mrb[11].mxu0  ;;  %v1038_v25 = vadd.f32 %v2301_v63, %v1037_v20 }
 0x22f   : > { %v958_v53 = vadd.f32 %v2301_v63, %v957_v51  ;;  %1093 = vst [vmem:[%s2309_s15 + $0xd8] sm:$0xff] %v1043_v52 }
 0x230   : > { %1077 = vst [vmem:[%s2309_s15 + $0x58] sm:$0xff] %v963_v54  ;;  %1092 = vst [vmem:[%s2309_s15 + $0xd0] sm:$0xff] %v1038_v25 }
 0x231   : > { %1076 = vst [vmem:[%s2309_s15 + $0x50] sm:$0xff] %v958_v53 }
 0x23c   : > { %v1340_v7 = vpop.f32.mrb[12].mxu1 }
 0x23d   : > { %v1316_v55 = vpop.f32.mrb[12].mxu0  ;;  %v1053_v59 = vadd.f32 %v1340_v7, %v2301_v63  ;;  %v1047_v60 = vpop.f32.mrb[13].mxu1 }
 0x23e   : > { %v973_v61 = vadd.f32 %v1316_v55, %v2301_v63  ;;  %v967_v2 = vpop.f32.mrb[13].mxu0  ;;  %v1048_v43 = vadd.f32 %v2301_v63, %v1047_v60 }
 0x23f   : > { %1095 = vst [vmem:[%s2309_s15 + $0xe8] sm:$0xff] %v1053_v59  ;;  %v968_v24 = vadd.f32 %v2301_v63, %v967_v2 }
 0x240   : > { %1079 = vst [vmem:[%s2309_s15 + $0x68] sm:$0xff] %v973_v61  ;;  %1094 = vst [vmem:[%s2309_s15 + $0xe0] sm:$0xff] %v1048_v43 }
 0x241   : > { %1078 = vst [vmem:[%s2309_s15 + $0x60] sm:$0xff] %v968_v24 }
 0x24c   : > { %v1343_v37 = vpop.f32.mrb[14].mxu1 }
 0x24d   : > { %v1319_v27 = vpop.f32.mrb[14].mxu0  ;;  %v1063_v41 = vadd.f32 %v1343_v37, %v2301_v63  ;;  %v1057_v45 = vpop.f32.mrb[15].mxu1 }
 0x24e   : > { %v983_v28 = vadd.f32 %v1319_v27, %v2301_v63  ;;  %v977_v49 = vpop.f32.mrb[15].mxu0  ;;  %v1058_v29 = vadd.f32 %v2301_v63, %v1057_v45 }
 0x24f   : > { %1097 = vst [vmem:[%s2309_s15 + $0xf8] sm:$0xff] %v1063_v41  ;;  %v978_v10 = vadd.f32 %v2301_v63, %v977_v49 }
 0x250   : > { %1081 = vst [vmem:[%s2309_s15 + $0x78] sm:$0xff] %v983_v28  ;;  %1096 = vst [vmem:[%s2309_s15 + $0xf0] sm:$0xff] %v1058_v29 }
 0x251   : > { %1080 = vst [vmem:[%s2309_s15 + $0x70] sm:$0xff] %v978_v10 }
 0x252   : > { %1588 = shalt.err (!%p1585_p7)
}
 0x253   : > { %s1589_s26 = scalar_lea.hbm %s2371_s10, 4096  ;;  %s1593_s14 = scalar_lea.hbm %s2427_s5, 8192 }
 0x254   : > { %p1590_p9 = scmp.ne.s32.totalorder %s2371_s10, %s1589_s26  ;;  %p1594_p5 = scmp.lt.u32.totalorder %s2371_s10, %s2427_s5 }
 0x255   : > { %p1595_p11 = scmp.lt.u32.totalorder %s1593_s14, %s1589_s26  ;;  %p1597_p4 = scmp.lt.u32.totalorder %s1589_s26, %s2371_s10 }
 0x256   : > { %p1591_p1 = pnand %p1590_p9, %p1778_p12 }
 0x257   : > { %p1596_p2 = por %p1595_p11, %p1594_p5 }
 0x258   : > { %p1592_p0 = pneg %p1591_p1 }
 0x259   : > { %p1598_p6 = por %p1597_p4, %p1596_p2 }
 0x25b   : > { %p1599_p8 = pnand %p1598_p6, %p1592_p0 }
 0x25d   : > { %1602 = shalt.err (!%p1599_p8)
}
 0x25e   : > { %s1652_s13 = smov 128   ;;  %s1653_s28 = smov 8  }
 0x25f   : > { %1398 = dma.vmem_to_hbm [thread:$0]  (%p1778_p12), %s2373_s29, 4096, %s2371_s10, %s1099_s22, %s1652_s13, %s1652_s13, %s1653_s28  }
 0x260 PF: > { %s1127_s27 = sand.u32 1, %s1633_s18   ;;  %p2442_p10 = scmp.ne.s32.totalorder %s2432_s25, 0 }
 0x261   : > { %p2443_p13 = scmp.ge.s32.totalorder %s1645_s21, 2  ;;  %s1128_s11 = scalar_lea.sflag [#allocation4], %s1127_s27 }
 0x263   : > { %p1409_p3 = pnand %p2443_p13, %p2442_p10 }
 0x265   : > { %1628 = dma.done.wait (!%p1409_p3), %s1128_s11, 4096  }
 0x266   : > { %1630 = vsyncadd (!%p1409_p3), %s1128_s11, 4294963200  ;;  %p19_p7 = scmp.ge.s32.totalorder %s1740_s30, 4   ;;  %s2444_s18 = smov %s1637_s19 }
 0x267   : > { %s2445_s19 = smov %s1641_s20  ;;  %s2446_s20 = smov %s1774_s8 }
 0x268   : > { %s2447_s21 = smov %s1740_s30  ;;  %21 = sbr.rel (!%p19_p7) target bundleno = 6 (0x6), region = 89 }
 0x26f   :  { %1133 = vsyncpa [#allocation3], 1 }
 0x270   :  { %1135 = vsyncpa [#allocation3 + $0x1], 1 }
 0x271   :  { %1136 = vsyncpa [#allocation6], 1 }
 0x272   :  { %1137 = vsyncpa [#allocation4], 1 }
 0x273   :  { %1139 = vsyncpa [#allocation4 + $0x1], 1 }

</bundles_post_ra>
